<compile_context>
chip_gen: v6e
topology: v6e:2x2x1
jax: 0.10.0
libtpu: 0.0.40
codegen_flags: <defaults>
</compile_context>

<pallas_src>
import functools
import math

import jax
import jax.numpy as jnp
from jax.experimental import pallas as pl
from jax.experimental.pallas import tpu as pltpu


def simulator_kernel(xu_ref, w_ref, noise_ref, o_ref, *, noise_scale):
    # Single fused MXU matmul:  [x | u] @ [[A],[B]]  -> (batch, state_dim)
    acc = jnp.dot(xu_ref[...], w_ref[...], preferred_element_type=jnp.float32)
    # Broadcast noise-row add on the VPU; noise_scale is a compile-time constant.
    o_ref[...] = (acc + noise_ref[...] * noise_scale).astype(o_ref.dtype)


def simulator_forward(x, u, W, noise_row, noise_scale):
    """x: (B, state_dim), u: (B, action_dim), W: (state_dim+action_dim, state_dim),
    noise_row: (1, state_dim).  Returns (B, state_dim) float32."""
    batch = x.shape[0]
    state_dim = W.shape[1]
    xu = jnp.concatenate([x, u], axis=-1)  # (batch, state_dim + action_dim)

    kernel = functools.partial(simulator_kernel, noise_scale=float(noise_scale))
    return pl.pallas_call(
        kernel,
        out_shape=jax.ShapeDtypeStruct((batch, state_dim), jnp.float32),
        # Gridless: whole arrays land in VMEM, no pipeline overhead, no double buffers.
        in_specs=[
            pl.BlockSpec(memory_space=pltpu.MemorySpace.VMEM),  # xu
            pl.BlockSpec(memory_space=pltpu.MemorySpace.VMEM),  # W
            pl.BlockSpec(memory_space=pltpu.MemorySpace.VMEM),  # noise row
        ],
        out_specs=pl.BlockSpec(memory_space=pltpu.MemorySpace.VMEM),
    )(xu, W, noise_row)


def kaiming_uniform(key, in_features, out_features, a=math.sqrt(5)):
    # Mirrors torch.nn.init.kaiming_uniform_ on a tensor of shape
    # (in_features, out_features): torch's _calculate_fan_in_and_fan_out uses
    # fan_in = tensor.size(1), which for this custom MatrixMultiplication
    # parameter layout is `out_features`.
    fan_in = out_features
    gain = math.sqrt(2.0 / (1.0 + a * a))
    std = gain / math.sqrt(fan_in)
    bound = math.sqrt(3.0) * std
    return jax.random.uniform(
        key, (in_features, out_features), dtype=jnp.float32,
        minval=-bound, maxval=bound,
    )


if __name__ == "__main__":
    state_dim = 128
    action_dim = 64
    batch = 8
    noise_scale = 0.01

    key = jax.random.PRNGKey(0)
    k_x, k_u, k_A, k_B, k_n = jax.random.split(key, 5)

    x = jax.random.normal(k_x, (batch, state_dim), dtype=jnp.float32)
    u = jax.random.normal(k_u, (batch, action_dim), dtype=jnp.float32)

    A = kaiming_uniform(k_A, state_dim, state_dim)   # Simulator.A.weight
    B = kaiming_uniform(k_B, action_dim, state_dim)  # Simulator.B.weight
    # One-time fusion at parameter-creation time: [x | u] @ W == x @ A + u @ B.
    W = jnp.concatenate([A, B], axis=0)              # (state_dim + action_dim, state_dim)

    # torch.randn((1, state_dim)) drawn per forward; here a deterministic draw.
    noise_row = jax.random.normal(k_n, (1, state_dim), dtype=jnp.float32)

    out = simulator_forward(x, u, W, noise_row, noise_scale)
    jax.block_until_ready(out)

    # Reference check (plain JAX) with the same deterministic noise draw.
    ref = x @ A + u @ B + noise_row * noise_scale
    assert out.shape == (batch, state_dim)
    assert jnp.allclose(out, ref, atol=1e-5, rtol=1e-5)

    print("KERNEL_OK")
</pallas_src>

<mosaic_0001>
module attributes {stable_mosaic.version = 11 : i64} {
  func.func @simulator_kernel(%arg0: memref<8x192xf32, #tpu.memory_space<vmem>>, %arg1: memref<192x128xf32, #tpu.memory_space<vmem>>, %arg2: memref<1x128xf32, #tpu.memory_space<vmem>>, %arg3: memref<8x128xf32, #tpu.memory_space<vmem>>) attributes {dimension_semantics = [], scalar_prefetch = 0 : i64, scratch_operands = 0 : i64, tpu.core_type = #tpu.core_type<tc>} {
    %c0 = arith.constant 0 : index
    %c0_0 = arith.constant 0 : index
    %0 = vector.load %arg0[%c0, %c0_0] : memref<8x192xf32, #tpu.memory_space<vmem>>, vector<8x192xf32>
    %c0_1 = arith.constant 0 : index
    %c0_2 = arith.constant 0 : index
    %1 = vector.load %arg1[%c0_1, %c0_2] : memref<192x128xf32, #tpu.memory_space<vmem>>, vector<192x128xf32>
    %cst = arith.constant dense<0.000000e+00> : vector<8x128xf32>
    %2 = tpu.matmul %0, %1, %cst {dimension_numbers = #tpu.dot_dimension_numbers<[1], [0], [0], [1], [0, 0, 1, 1], [], []>} : vector<8x192xf32>, vector<192x128xf32>, vector<8x128xf32> -> vector<8x128xf32>
    %c0_3 = arith.constant 0 : index
    %c0_4 = arith.constant 0 : index
    %3 = vector.load %arg2[%c0_3, %c0_4] : memref<1x128xf32, #tpu.memory_space<vmem>>, vector<1x128xf32>
    %cst_5 = arith.constant 0.00999999977 : f32
    %4 = vector.broadcast %cst_5 : f32 to vector<1x128xf32>
    %5 = arith.mulf %3, %4 : vector<1x128xf32>
    %6 = vector.broadcast %5 : vector<1x128xf32> to vector<8x128xf32>
    %7 = arith.addf %2, %6 : vector<8x128xf32>
    %c0_6 = arith.constant 0 : index
    %c0_7 = arith.constant 0 : index
    %8 = vector.load %arg3[%c0_6, %c0_7] : memref<8x128xf32, #tpu.memory_space<vmem>>, vector<8x128xf32>
    tpu.vector_store %arg3[%c0_6, %c0_7], %7 {strides = array<i32>} : memref<8x128xf32, #tpu.memory_space<vmem>>, vector<8x128xf32>,
    return
  }
}

</mosaic_0001>

<bundles_post_ra>
// kernel: tpu_custom_call.1
= control target key start
LH: loop header
LB: loop body
LE: loop exit
PB: predicated region body
PF: predicated region fallthrough
CT: control target
= control target key end

     0   :  { %8 = vsyncpa [#allocation3], 0  ;;  %s301_s0 = inlined_call_operand.hbm [shape: f32[8,192], index: 0, kind: input, shape index: {}]   ;;  %s302_s1 = inlined_call_operand.hbm [shape: f32[192,128], index: 1, kind: input, shape index: {}]   ;;  %s303_s2 = inlined_call_operand.vmem [shape: f32[1,128], index: 2, kind: input, shape index: {}]   ;;  %s304_s3 = inlined_call_operand.hbm [shape: f32[8,128], index: 3, kind: output, shape index: {}]  }
   0x1   :  { %9 = vsyncpa [#allocation6], 0 }
   0x2   :  { %10 = vsyncpa [#allocation4], 0  ;;  %s239_s12 = smov [#allocation2]   ;;  %s240_s14 = smov [#allocation5]  }
   0x3   :  { %s17_s13 = sshll.u32 %s239_s12, 4  ;;  %s26_s15 = sshll.u32 %s240_s14, 4  ;;  %s18_s13 = int_to_ptr.vmem [resolvable:$true] %s17_s13  ;;  %s27_s15 = int_to_ptr.vmem [resolvable:$true] %s26_s15 }
   0x4   :  { %s181_s16 = scalar_lea.vmem %s18_s13, 256  ;;  %p186_p1 = scmp.lt.s32.totalorder %s18_s13, %s18_s13 }
   0x5   :  { %p182_p0 = scmp.ne.s32.totalorder %s18_s13, %s181_s16  ;;  %p187_p2 = scmp.lt.s32.totalorder %s181_s16, %s181_s16 }
   0x7   :  { %p188_p3 = por %p187_p2, %p186_p1 }
   0x9   :  { %p189_p4 = pnand %p188_p3, %p182_p0 }
   0xb   :  { %192 = shalt.err (!%p189_p4)
}
   0xc   :  { %20 = dma.hbm_to_vmem [thread:$0]  %s301_s0, 256, %s18_s13, [#allocation3]  }
   0xd   :  { %s201_s19 = scalar_lea.vmem %s27_s15, 3072  ;;  %p206_p6 = scmp.lt.s32.totalorder %s27_s15, %s27_s15 }
   0xe   :  { %p202_p5 = scmp.ne.s32.totalorder %s27_s15, %s201_s19  ;;  %p207_p7 = scmp.lt.s32.totalorder %s201_s19, %s201_s19 }
  0x10   :  { %p208_p8 = por %p207_p7, %p206_p6 }
  0x12   :  { %p209_p9 = pnand %p208_p8, %p202_p5 }
  0x14   :  { %212 = shalt.err (!%p209_p9)
}
  0x15   :  { %s241_s20 = smov 128   ;;  %s242_s21 = smov 8  }
  0x16   :  { %32 = dma.hbm_to_vmem [thread:$0]  %s302_s1, 3072, %s27_s15, [#allocation6], %s241_s20, %s241_s20, %s242_s21  }
  0x17   :  { %233 = dma.done.wait [#allocation3], 256  }
  0x18   :  { %234 = vsyncadd [#allocation3], 4294967040 }
  0x19   :  { %235 = dma.done.wait [#allocation6], 3072  }
  0x1a   :  { %236 = vsyncadd [#allocation6], 4294964224  ;;  %v243_v0 = vmov 0.0   ;;  %v58_v1 = vld [vmem:[#allocation5 + $0x78] sm:$0xff]  ;;  %v57_v2 = vld [vmem:[#allocation5 + $0x70] sm:$0xff]  ;;  %vm75_vm0 = vcmask 523264   ;;  %v70_v27 = vlaneseq }
  0x1b   :  { %79 = vmatprep.subr.mxu0 %v243_v0  ;;  %v56_v3 = vld [vmem:[#allocation5 + $0x68] sm:$0xff]  ;;  %v55_v4 = vld [vmem:[#allocation5 + $0x60] sm:$0xff]  ;;  %v54_v5 = vld [vmem:[#allocation5 + $0x58] sm:$0xff]  ;;  %s244_s24 = smov [#allocation7]  }
  0x1c   :  { %80 = vmatpush1.msra.mxu0 %v58_v1  ;;  %v53_v6 = vld [vmem:[#allocation5 + $0x50] sm:$0xff]  ;;  %v42_v7 = vld [vmem:[#allocation2 + $0x8] sm:$0xff]  ;;  %v52_v8 = vld [vmem:[#allocation5 + $0x48] sm:$0xff]  ;;  %v71_v28 = vshrl.u32 %v70_v27, 7  ;;  %s156_s25 = sshll.u32 %s244_s24, 4  ;;  %s157_s25 = int_to_ptr.vmem [resolvable:$true] %s156_s25 }
  0x1d   :  { %81 = vmatprep.subr.mxu0 %v243_v0  ;;  %166 = vmatprep.mubr.msk.f32.mxu0 %vm75_vm0, %v42_v7  ;;  %v51_v9 = vld [vmem:[#allocation5 + $0x40] sm:$0xff]  ;;  %v50_v10 = vld [vmem:[#allocation5 + $0x38] sm:$0xff]  ;;  %v49_v11 = vld [vmem:[#allocation5 + $0x30] sm:$0xff]  ;;  %s213_s26 = scalar_lea.vmem %s157_s25, 128  ;;  %p218_p11 = scmp.lt.s32.totalorder %s157_s25, %s157_s25 }
  0x1e   :  { %82 = vmatpush1.msra.mxu0 %v57_v2  ;;  %v48_v12 = vld [vmem:[#allocation5 + $0x28] sm:$0xff]  ;;  %v47_v13 = vld [vmem:[#allocation5 + $0x20] sm:$0xff]  ;;  %v46_v14 = vld [vmem:[#allocation5 + $0x18] sm:$0xff]  ;;  %v72_v31 = vsub.s32 0, %v71_v28  ;;  %p214_p10 = scmp.ne.s32.totalorder %s157_s25, %s213_s26  ;;  %p219_p12 = scmp.lt.s32.totalorder %s213_s26, %s213_s26 }
  0x1f   :  { %83 = vmatprep.subr.mxu0 %v243_v0  ;;  %v45_v15 = vld [vmem:[#allocation5 + $0x10] sm:$0xff]  ;;  %v44_v16 = vld [vmem:[#allocation5 + $0x8] sm:$0xff]  ;;  %v43_v17 = vld [vmem:[#allocation5] sm:$0xff] }
  0x20   :  { %84 = vmatpush1.msra.mxu0 %v56_v3  ;;  %v66_v18 = vld [vmem:[#allocation5 + $0xb8] sm:$0xff]  ;;  %v65_v19 = vld [vmem:[#allocation5 + $0xb0] sm:$0xff]  ;;  %v64_v20 = vld [vmem:[#allocation5 + $0xa8] sm:$0xff]  ;;  %p220_p13 = por %p219_p12, %p218_p11 }
  0x21   :  { %85 = vmatprep.subr.mxu0 %v243_v0  ;;  %v63_v21 = vld [vmem:[#allocation5 + $0xa0] sm:$0xff]  ;;  %v62_v22 = vld [vmem:[#allocation5 + $0x98] sm:$0xff]  ;;  %v61_v23 = vld [vmem:[#allocation5 + $0x90] sm:$0xff] }
  0x22   :  { %86 = vmatpush1.msra.mxu0 %v55_v4  ;;  %v60_v24 = vld [vmem:[#allocation5 + $0x88] sm:$0xff]  ;;  %v59_v25 = vld [vmem:[#allocation5 + $0x80] sm:$0xff]  ;;  %v41_v26 = vld [vmem:[#allocation2] sm:$0xff]  ;;  %p221_p0 = pnand %p220_p13, %p214_p10 }
  0x23   :  { %87 = vmatprep.subr.mxu0 %v243_v0  ;;  %v67_v29 = vld [vmem:[%s303_s2] sm:$0x1] }
  0x24   :  { %88 = vmatpush1.msra.mxu0 %v54_v5  ;;  %v68_v30 = vmul.f32 0.01, %v67_v29 }
  0x25   :  { %89 = vmatprep.subr.mxu0 %v243_v0 }
  0x26   :  { %90 = vmatpush1.msra.mxu0 %v53_v6  ;;  %v73_v32 = vrot.slane %v68_v30, %v72_v31 }
  0x27   :  { %91 = vmatprep.subr.mxu0 %v243_v0 }
  0x28   :  { %92 = vmatpush1.msra.mxu0 %v52_v8 }
  0x29   :  { %93 = vmatprep.subr.mxu0 %v243_v0 }
  0x2a   :  { %94 = vmatpush1.msra.mxu0 %v51_v9 }
  0x2b   :  { %95 = vmatprep.subr.mxu0 %v243_v0 }
  0x2c   :  { %96 = vmatpush1.msra.mxu0 %v50_v10 }
  0x2d   :  { %97 = vmatprep.subr.mxu0 %v243_v0 }
  0x2e   :  { %98 = vmatpush1.msra.mxu0 %v49_v11 }
  0x2f   :  { %99 = vmatprep.subr.mxu0 %v243_v0 }
  0x30   :  { %100 = vmatpush1.msra.mxu0 %v48_v12 }
  0x31   :  { %101 = vmatprep.subr.mxu0 %v243_v0 }
  0x32   :  { %102 = vmatpush1.msra.mxu0 %v47_v13 }
  0x33   :  { %103 = vmatprep.subr.mxu0 %v243_v0 }
  0x34   :  { %104 = vmatpush1.msra.mxu0 %v46_v14 }
  0x35   :  { %105 = vmatprep.subr.mxu0 %v243_v0 }
  0x36   :  { %106 = vmatpush1.msra.mxu0 %v45_v15 }
  0x37   :  { %107 = vmatprep.subr.mxu0 %v243_v0 }
  0x38   :  { %108 = vmatpush1.msra.mxu0 %v44_v16 }
  0x39   :  { %109 = vmatprep.subr.mxu0 %v243_v0 }
  0x3a   :  { %110 = vmatpush1.msra.mxu0 %v43_v17 }
  0x3b   :  { %127 = vmatprep.subr.mxu0 %v243_v0 }
  0x3c   :  { %128 = vmatpush2.msra.mxu0 %v66_v18 }
  0x3d   :  { %129 = vmatprep.subr.mxu0 %v243_v0 }
  0x3e   :  { %130 = vmatpush2.msra.mxu0 %v65_v19 }
  0x3f   :  { %131 = vmatprep.subr.mxu0 %v243_v0 }
  0x40   :  { %132 = vmatpush2.msra.mxu0 %v64_v20 }
  0x41   :  { %133 = vmatprep.subr.mxu0 %v243_v0 }
  0x42   :  { %134 = vmatpush2.msra.mxu0 %v63_v21 }
  0x43   :  { %135 = vmatprep.subr.mxu0 %v243_v0 }
  0x44   :  { %136 = vmatpush2.msra.mxu0 %v62_v22 }
  0x45   :  { %137 = vmatprep.subr.mxu0 %v243_v0 }
  0x46   :  { %138 = vmatpush2.msra.mxu0 %v61_v23 }
  0x47   :  { %139 = vmatprep.subr.mxu0 %v243_v0 }
  0x48   :  { %140 = vmatpush2.msra.mxu0 %v60_v24 }
  0x49   :  { %141 = vmatprep.subr.mxu0 %v243_v0 }
  0x4a   :  { %142 = vmatpush2.msra.mxu0 %v59_v25 }
  0x4b   :  { %144 = vmatmul.mubr.f32.vlgmr.msra.gmra.mxu0 %v41_v26 }
 0x10b   :  { %v145_v33 = vpop.f32.mrf.mxu0 }
 0x10c   :  { %v146_v34 = vadd.f32 %v145_v33, %v73_v32 }
 0x10d   :  { %v147_v35 = vpop.f32.mrf.mxu0 }
 0x10e   :  { %149 = vst [vmem:[#allocation7] sm:$0xff] %v146_v34 }
 0x10f   :  { %224 = shalt.err (!%p221_p0)
}
 0x110   :  { %159 = dma.vmem_to_hbm [thread:$0]  %s157_s25, 128, %s304_s3, [#allocation4]  }
 0x111   :  { %237 = dma.done.wait [#allocation4], 128  }
 0x112   :  { %238 = vsyncadd [#allocation4], 4294967168 }
 0x113   :  { %163 = vsyncpa [#allocation3], 1 }
 0x114   :  { %164 = vsyncpa [#allocation6], 1 }
 0x115   :  { %165 = vsyncpa [#allocation4], 1 }

</bundles_post_ra>
